<compile_context>
chip_gen: v7x
topology: tpu7x:2x2x1
jax: 0.10.0
libtpu: 0.0.40
codegen_flags: <defaults>
</compile_context>

<pallas_src>
import jax
import jax.numpy as jnp
from jax.experimental import pallas as pl
from jax.experimental.pallas import tpu as pltpu


def _qnet_kernel(x_ref, a_ref, w1x_ref, w1a_ref, w2_ref, w3_ref, b_ref, out_ref):
    # fc1: fused concat  ([x, a] @ w1 == x @ w1x + a @ w1a)  + bias + ReLU
    h = jnp.dot(x_ref[...], w1x_ref[...], preferred_element_type=jnp.float32)
    h = h + jnp.dot(a_ref[...], w1a_ref[...], preferred_element_type=jnp.float32)
    h = jnp.maximum(h + b_ref[0:1, :], 0.0)
    # fc2 + ReLU (dominant matmul)
    h = jnp.dot(h, w2_ref[...], preferred_element_type=jnp.float32)
    h = jnp.maximum(h + b_ref[1:2, :], 0.0)
    # fc3 head (out_dim == 1), computed directly as a lane-dense (1, tb) row:
    #   q = w3 (1,256) contracted with h (tb,256) on the feature dim.
    q = jax.lax.dot_general(
        w3_ref[...], h,
        dimension_numbers=(((1,), (1,)), ((), ())),
        preferred_element_type=jnp.float32)                 # (1, tb)
    out_ref[...] = (q + b_ref[2:3, 0:1]).astype(out_ref.dtype)


def _round_up(x, m):
    return ((x + m - 1) // m) * m


def _batch_tile(B):
    """Pick the per-step batch tile.

    Small batches: one full-extent block (block dims == array dims, so no
    (8,128) alignment needed).  Larger batches: 128-aligned tiles of up to
    1024/2048 rows, chosen so nb >= 2 (keeps both v7x TensorCores busy)."""
    if B <= 512:
        return B
    if B <= 4096:
        return min(1024, _round_up(-(-B // 2), 128))
    return 2048


def qnetwork_forward(x, a, params):
    """x: (B, obs_dim) f32, a: (B, action_dim) f32 -> (B, 1) f32."""
    w1x, w1a, w2, w3_row, b_pack = params
    B, obs_dim = x.shape
    action_dim = a.shape[1]
    H = w2.shape[0]

    tb = _batch_tile(B)
    nb = pl.cdiv(B, tb)
    Bp = nb * tb  # only the (tiny) output is allocated at the padded size

    out = pl.pallas_call(
        _qnet_kernel,
        out_shape=jax.ShapeDtypeStruct((1, Bp), jnp.float32),
        grid=(nb,),
        in_specs=[
            pl.BlockSpec((tb, obs_dim), lambda i: (i, 0)),      # x tile
            pl.BlockSpec((tb, action_dim), lambda i: (i, 0)),   # a tile
            pl.BlockSpec((obs_dim, H), lambda i: (0, 0)),       # w1x (resident)
            pl.BlockSpec((action_dim, H), lambda i: (0, 0)),    # w1a (resident)
            pl.BlockSpec((H, H), lambda i: (0, 0)),             # w2  (resident)
            pl.BlockSpec((1, H), lambda i: (0, 0)),             # w3 row
            pl.BlockSpec((3, H), lambda i: (0, 0)),             # packed biases
        ],
        out_specs=pl.BlockSpec((1, tb), lambda i: (0, i)),      # lane-dense row
        compiler_params=pltpu.CompilerParams(
            dimension_semantics=("parallel",)),
    )(x, a, w1x, w1a, w2, w3_row, b_pack)

    # (1, Bp) lane-dense kernel output -> (B, 1); trivial B-float reshape/slice.
    return out[0, :B].reshape(B, 1)


def init_qnetwork_params(key, obs_dim, action_dim, hidden=256):
    """Deterministic init mirroring nn.Linear's default U(-1/sqrt(fan_in), +)."""
    def linear(k, fan_in, fan_out):
        kw, kb = jax.random.split(k)
        bound = 1.0 / jnp.sqrt(jnp.float32(fan_in))
        w = jax.random.uniform(kw, (fan_in, fan_out), jnp.float32, -bound, bound)
        b = jax.random.uniform(kb, (fan_out,), jnp.float32, -bound, bound)
        return w, b

    k1, k2, k3 = jax.random.split(key, 3)
    w1, b1 = linear(k1, obs_dim + action_dim, hidden)
    w2, b2 = linear(k2, hidden, hidden)
    w3, b3 = linear(k3, hidden, 1)

    # Kernel-friendly layout (done once at init, not per call):
    #  * w1 split so [x, a] never has to be materialized,
    #  * w3 stored as a (1, hidden) row for the lane-dense head matmul,
    #  * biases packed into a single (3, hidden) slab (b3 lives at [2, 0]).
    w1x, w1a = w1[:obs_dim], w1[obs_dim:]
    w3_row = w3.T
    b_pack = jnp.zeros((3, hidden), jnp.float32)
    b_pack = b_pack.at[0].set(b1).at[1].set(b2).at[2, 0].set(b3[0])
    return (w1x, w1a, w2, w3_row, b_pack)


def qnetwork_ref(x, a, params):
    """Pure-JAX reference (same math as the PyTorch module)."""
    w1x, w1a, w2, w3_row, b_pack = params
    w1 = jnp.concatenate([w1x, w1a], axis=0)
    b1, b2, b3 = b_pack[0], b_pack[1], b_pack[2, 0]
    hp = jax.lax.Precision.HIGHEST
    h = jnp.concatenate([x, a], axis=1)
    h = jnp.maximum(jnp.dot(h, w1, precision=hp) + b1, 0.0)
    h = jnp.maximum(jnp.dot(h, w2, precision=hp) + b2, 0.0)
    return jnp.dot(h, w3_row.T, precision=hp) + b3


if __name__ == "__main__":
    obs_dim, action_dim, batch = 16, 8, 8

    key = jax.random.PRNGKey(0)
    kx, ka, kp = jax.random.split(key, 3)
    x = jax.random.normal(kx, (batch, obs_dim), jnp.float32)
    a = jax.random.normal(ka, (batch, action_dim), jnp.float32)
    params = init_qnetwork_params(kp, obs_dim, action_dim)

    out = qnetwork_forward(x, a, params)
    out = jax.block_until_ready(out)

    ref = qnetwork_ref(x, a, params)
    assert out.shape == (batch, 1), out.shape
    assert jnp.allclose(out, ref, atol=1e-4, rtol=1e-4), (out, ref)

    print("KERNEL_OK")
</pallas_src>

<mosaic_0001>
module attributes {stable_mosaic.version = 11 : i64} {
  func.func @_qnet_kernel(%arg0: i32, %arg1: memref<8x16xf32, #tpu.memory_space<vmem>>, %arg2: memref<8x8xf32, #tpu.memory_space<vmem>>, %arg3: memref<16x256xf32, #tpu.memory_space<vmem>>, %arg4: memref<8x256xf32, #tpu.memory_space<vmem>>, %arg5: memref<256x256xf32, #tpu.memory_space<vmem>>, %arg6: memref<1x256xf32, #tpu.memory_space<vmem>>, %arg7: memref<3x256xf32, #tpu.memory_space<vmem>>, %arg8: memref<1x8xf32, #tpu.memory_space<vmem>>) attributes {dimension_semantics = [#tpu.dimension_semantics<parallel>], iteration_bounds = array<i64: 1>, scalar_prefetch = 0 : i64, scratch_operands = 0 : i64, tpu.core_type = #tpu.core_type<tc>, window_params = [{transform_indices = @transform_0, window_bounds = array<i64: 8, 16>}, {transform_indices = @transform_1, window_bounds = array<i64: 8, 8>}, {pipeline_mode = #tpu.pipeline_mode<synchronous>, transform_indices = @transform_2, window_bounds = array<i64: 16, 256>}, {pipeline_mode = #tpu.pipeline_mode<synchronous>, transform_indices = @transform_3, window_bounds = array<i64: 8, 256>}, {pipeline_mode = #tpu.pipeline_mode<synchronous>, transform_indices = @transform_4, window_bounds = array<i64: 256, 256>}, {pipeline_mode = #tpu.pipeline_mode<synchronous>, transform_indices = @transform_5, window_bounds = array<i64: 1, 256>}, {pipeline_mode = #tpu.pipeline_mode<synchronous>, transform_indices = @transform_6, window_bounds = array<i64: 3, 256>}, {transform_indices = @transform_7, window_bounds = array<i64: 1, 8>}]} {
    %c0 = arith.constant 0 : index
    %c0_0 = arith.constant 0 : index
    %0 = vector.load %arg1[%c0, %c0_0] : memref<8x16xf32, #tpu.memory_space<vmem>>, vector<8x16xf32>
    %c0_1 = arith.constant 0 : index
    %c0_2 = arith.constant 0 : index
    %1 = vector.load %arg3[%c0_1, %c0_2] : memref<16x256xf32, #tpu.memory_space<vmem>>, vector<16x256xf32>
    %cst = arith.constant dense<0.000000e+00> : vector<8x256xf32>
    %2 = tpu.matmul %0, %1, %cst {dimension_numbers = #tpu.dot_dimension_numbers<[1], [0], [0], [1], [0, 0, 1, 1], [], []>} : vector<8x16xf32>, vector<16x256xf32>, vector<8x256xf32> -> vector<8x256xf32>
    %c0_3 = arith.constant 0 : index
    %c0_4 = arith.constant 0 : index
    %3 = vector.load %arg2[%c0_3, %c0_4] : memref<8x8xf32, #tpu.memory_space<vmem>>, vector<8x8xf32>
    %c0_5 = arith.constant 0 : index
    %c0_6 = arith.constant 0 : index
    %4 = vector.load %arg4[%c0_5, %c0_6] : memref<8x256xf32, #tpu.memory_space<vmem>>, vector<8x256xf32>
    %cst_7 = arith.constant dense<0.000000e+00> : vector<8x256xf32>
    %5 = tpu.matmul %3, %4, %cst_7 {dimension_numbers = #tpu.dot_dimension_numbers<[1], [0], [0], [1], [0, 0, 1, 1], [], []>} : vector<8x8xf32>, vector<8x256xf32>, vector<8x256xf32> -> vector<8x256xf32>
    %6 = arith.addf %2, %5 : vector<8x256xf32>
    %c0_8 = arith.constant 0 : index
    %c0_9 = arith.constant 0 : index
    %7 = vector.load %arg7[%c0_8, %c0_9] : memref<3x256xf32, #tpu.memory_space<vmem>>, vector<1x256xf32>
    %8 = vector.broadcast %7 : vector<1x256xf32> to vector<8x256xf32>
    %9 = arith.addf %6, %8 : vector<8x256xf32>
    %cst_10 = arith.constant 0.000000e+00 : f32
    %10 = vector.broadcast %cst_10 : f32 to vector<8x256xf32>
    %11 = arith.maximumf %9, %10 : vector<8x256xf32>
    %c0_11 = arith.constant 0 : index
    %c0_12 = arith.constant 0 : index
    %12 = vector.load %arg5[%c0_11, %c0_12] : memref<256x256xf32, #tpu.memory_space<vmem>>, vector<256x256xf32>
    %cst_13 = arith.constant dense<0.000000e+00> : vector<8x256xf32>
    %13 = tpu.matmul %11, %12, %cst_13 {dimension_numbers = #tpu.dot_dimension_numbers<[1], [0], [0], [1], [0, 0, 1, 1], [], []>} : vector<8x256xf32>, vector<256x256xf32>, vector<8x256xf32> -> vector<8x256xf32>
    %c1 = arith.constant 1 : index
    %c0_14 = arith.constant 0 : index
    %14 = vector.load %arg7[%c1, %c0_14] : memref<3x256xf32, #tpu.memory_space<vmem>>, vector<1x256xf32>
    %15 = vector.broadcast %14 : vector<1x256xf32> to vector<8x256xf32>
    %16 = arith.addf %13, %15 : vector<8x256xf32>
    %cst_15 = arith.constant 0.000000e+00 : f32
    %17 = vector.broadcast %cst_15 : f32 to vector<8x256xf32>
    %18 = arith.maximumf %16, %17 : vector<8x256xf32>
    %c0_16 = arith.constant 0 : index
    %c0_17 = arith.constant 0 : index
    %19 = vector.load %arg6[%c0_16, %c0_17] : memref<1x256xf32, #tpu.memory_space<vmem>>, vector<1x256xf32>
    %cst_18 = arith.constant dense<0.000000e+00> : vector<1x8xf32>
    %20 = tpu.matmul %19, %18, %cst_18 {dimension_numbers = #tpu.dot_dimension_numbers<[1], [1], [0], [0], [0, 0, 1, 0], [], []>} : vector<1x256xf32>, vector<8x256xf32>, vector<1x8xf32> -> vector<1x8xf32>
    %c2 = arith.constant 2 : index
    %c0_19 = arith.constant 0 : index
    %21 = vector.load %arg7[%c2, %c0_19] : memref<3x256xf32, #tpu.memory_space<vmem>>, vector<1x1xf32>
    %22 = vector.broadcast %21 : vector<1x1xf32> to vector<1x8xf32>
    %23 = arith.addf %20, %22 : vector<1x8xf32>
    %c0_20 = arith.constant 0 : index
    %c0_21 = arith.constant 0 : index
    %24 = vector.load %arg8[%c0_20, %c0_21] : memref<1x8xf32, #tpu.memory_space<vmem>>, vector<1x8xf32>
    tpu.vector_store %arg8[%c0_20, %c0_21], %23 {strides = array<i32>} : memref<1x8xf32, #tpu.memory_space<vmem>>, vector<1x8xf32>,
    return
  }
  func.func @transform_0(%arg0: i32) -> (i32, i32) {
    %c0_i32 = arith.constant 0 : i32
    %c0_i32_0 = arith.constant 0 : i32
    return %arg0, %c0_i32 : i32, i32
  }
  func.func @transform_1(%arg0: i32) -> (i32, i32) {
    %c0_i32 = arith.constant 0 : i32
    %c0_i32_0 = arith.constant 0 : i32
    return %arg0, %c0_i32 : i32, i32
  }
  func.func @transform_2(%arg0: i32) -> (i32, i32) {
    %c0_i32 = arith.constant 0 : i32
    %c0_i32_0 = arith.constant 0 : i32
    %c0_i32_1 = arith.constant 0 : i32
    return %c0_i32, %c0_i32_0 : i32, i32
  }
  func.func @transform_3(%arg0: i32) -> (i32, i32) {
    %c0_i32 = arith.constant 0 : i32
    %c0_i32_0 = arith.constant 0 : i32
    %c0_i32_1 = arith.constant 0 : i32
    return %c0_i32, %c0_i32_0 : i32, i32
  }
  func.func @transform_4(%arg0: i32) -> (i32, i32) {
    %c0_i32 = arith.constant 0 : i32
    %c0_i32_0 = arith.constant 0 : i32
    %c0_i32_1 = arith.constant 0 : i32
    return %c0_i32, %c0_i32_0 : i32, i32
  }
  func.func @transform_5(%arg0: i32) -> (i32, i32) {
    %c0_i32 = arith.constant 0 : i32
    %c0_i32_0 = arith.constant 0 : i32
    %c0_i32_1 = arith.constant 0 : i32
    return %c0_i32, %c0_i32_0 : i32, i32
  }
  func.func @transform_6(%arg0: i32) -> (i32, i32) {
    %c0_i32 = arith.constant 0 : i32
    %c0_i32_0 = arith.constant 0 : i32
    %c0_i32_1 = arith.constant 0 : i32
    return %c0_i32, %c0_i32_0 : i32, i32
  }
  func.func @transform_7(%arg0: i32) -> (i32, i32) {
    %c0_i32 = arith.constant 0 : i32
    %c0_i32_0 = arith.constant 0 : i32
    return %c0_i32, %arg0 : i32, i32
  }
}

</mosaic_0001>

<bundles_post_ra>
// kernel: tpu_custom_call.1
= control target key start
LH: loop header
LB: loop body
LE: loop exit
PB: predicated region body
PF: predicated region fallthrough
CT: control target
= control target key end

     0   :  { %12 = vsyncpa [#allocation3], 0  ;;  %s894_s0 = inlined_call_operand.hbm [shape: f32[8,16], index: 0, kind: input, shape index: {}]   ;;  %s895_s1 = inlined_call_operand.hbm [shape: f32[8,8], index: 1, kind: input, shape index: {}]   ;;  %s896_s2 = inlined_call_operand.hbm [shape: f32[16,256], index: 2, kind: input, shape index: {}]   ;;  %s897_s3 = inlined_call_operand.hbm [shape: f32[8,256], index: 3, kind: input, shape index: {}]   ;;  %s898_s4 = inlined_call_operand.hbm [shape: f32[256,256], index: 4, kind: input, shape index: {}]   ;;  %s899_s5 = inlined_call_operand.vmem [shape: f32[1,256], index: 5, kind: input, shape index: {}]   ;;  %s900_s6 = inlined_call_operand.vmem [shape: f32[3,256], index: 6, kind: input, shape index: {}]   ;;  %s901_s7 = inlined_call_operand.hbm [shape: f32[1,8], index: 7, kind: output, shape index: {}]  }
   0x1   :  { %13 = vsyncpa [#allocation6], 0 }
   0x2   :  { %14 = vsyncpa [#allocation9], 0 }
   0x3   :  { %15 = vsyncpa [#allocation4], 0  ;;  %s752_s24 = smov [#allocation5]   ;;  %s753_s26 = smov [#allocation8]  }
   0x4   :  { %s32_s25 = sshll.u32 %s752_s24, 4  ;;  %s54_s27 = sshll.u32 %s753_s26, 4  ;;  %s33_s25 = int_to_ptr.vmem [resolvable:$true] %s32_s25  ;;  %s55_s27 = int_to_ptr.vmem [resolvable:$true] %s54_s27 }
   0x5   :  { %s612_s30 = scalar_lea.hbm %s895_s1, 128 }
   0x6   :  { %p613_p0 = scmp.ne.s32.totalorder %s895_s1, %s612_s30  ;;  %p616_p1 = scmp.lt.u32.totalorder %s612_s30, %s895_s1 }
   0x8   :  { %p618_p2 = pnand %p616_p1, %p613_p0 }
   0xa   :  { %621 = shalt.err (!%p618_p2)
}
   0xb   :  { %s622_s12 = scalar_lea.vmem %s33_s25, 128  ;;  %p627_p4 = scmp.lt.s32.totalorder %s33_s25, %s33_s25 }
   0xc   :  { %p623_p3 = scmp.ne.s32.totalorder %s33_s25, %s622_s12  ;;  %p628_p5 = scmp.lt.s32.totalorder %s622_s12, %s622_s12 }
   0xe   :  { %p629_p6 = por %p628_p5, %p627_p4 }
  0x10   :  { %p630_p7 = pnand %p629_p6, %p623_p3 }
  0x12   :  { %633 = shalt.err (!%p630_p7)
}
  0x13   :  { %35 = dma.hbm_to_vmem [thread:$0]  %s895_s1, 128, %s33_s25, [#allocation6]  }
  0x14   :  { %s634_s17 = scalar_lea.hbm %s897_s3, 256 }
  0x15   :  { %p635_p8 = scmp.ne.s32.totalorder %s897_s3, %s634_s17  ;;  %p638_p9 = scmp.lt.u32.totalorder %s634_s17, %s897_s3 }
  0x17   :  { %p640_p10 = pnand %p638_p9, %p635_p8 }
  0x19   :  { %643 = shalt.err (!%p640_p10)
}
  0x1a   :  { %s644_s22 = scalar_lea.vmem %s55_s27, 256  ;;  %p649_p12 = scmp.lt.s32.totalorder %s55_s27, %s55_s27 }
  0x1b   :  { %p645_p11 = scmp.ne.s32.totalorder %s55_s27, %s644_s22  ;;  %p650_p13 = scmp.lt.s32.totalorder %s644_s22, %s644_s22 }
  0x1d   :  { %p651_p0 = por %p650_p13, %p649_p12 }
  0x1f   :  { %p652_p1 = pnand %p651_p0, %p645_p11 }
  0x21   :  { %655 = shalt.err (!%p652_p1)
}
  0x22   :  { %57 = dma.hbm_to_vmem [thread:$0]  %s897_s3, 256, %s55_s27, [#allocation9]  }
  0x23   :  { %s754_s24 = smov [#allocation2]   ;;  %s755_s26 = smov [#allocation7]  }
  0x24   :  { %s22_s25 = sshll.u32 %s754_s24, 4  ;;  %s41_s28 = sshll.u32 %s755_s26, 4  ;;  %s23_s25 = int_to_ptr.vmem [resolvable:$true] %s22_s25  ;;  %s827_s28 = int_to_ptr.vmem [resolvable:$true] %s41_s28 }
  0x25   :  { %s656_s8 = scalar_lea.hbm %s894_s0, 128 }
  0x26   :  { %p657_p2 = scmp.ne.s32.totalorder %s894_s0, %s656_s8  ;;  %p660_p3 = scmp.lt.u32.totalorder %s656_s8, %s894_s0 }
  0x28   :  { %p662_p4 = pnand %p660_p3, %p657_p2 }
  0x2a   :  { %665 = shalt.err (!%p662_p4)
}
  0x2b   :  { %s666_s3 = scalar_lea.vmem %s23_s25, 128  ;;  %p671_p6 = scmp.lt.s32.totalorder %s23_s25, %s23_s25 }
  0x2c   :  { %p667_p5 = scmp.ne.s32.totalorder %s23_s25, %s666_s3  ;;  %p672_p7 = scmp.lt.s32.totalorder %s666_s3, %s666_s3 }
  0x2e   :  { %p673_p8 = por %p672_p7, %p671_p6 }
  0x30   :  { %p674_p9 = pnand %p673_p8, %p667_p5 }
  0x32   :  { %677 = shalt.err (!%p674_p9)
}
  0x33   :  { %25 = dma.hbm_to_vmem [thread:$0]  %s894_s0, 128, %s23_s25, [#allocation3]  }
  0x34   :  { %s678_s16 = scalar_lea.hbm %s896_s2, 512 }
  0x35   :  { %p679_p10 = scmp.ne.s32.totalorder %s896_s2, %s678_s16  ;;  %p682_p11 = scmp.lt.u32.totalorder %s678_s16, %s896_s2 }
  0x37   :  { %p684_p12 = pnand %p682_p11, %p679_p10 }
  0x39   :  { %687 = shalt.err (!%p684_p12)
}
  0x3a   :  { %s688_s21 = scalar_lea.vmem %s827_s28, 512  ;;  %p693_p0 = scmp.lt.s32.totalorder %s827_s28, %s827_s28 }
  0x3b   :  { %p689_p13 = scmp.ne.s32.totalorder %s827_s28, %s688_s21  ;;  %p694_p1 = scmp.lt.s32.totalorder %s688_s21, %s688_s21 }
  0x3d   :  { %p695_p2 = por %p694_p1, %p693_p0 }
  0x3f   :  { %p696_p3 = pnand %p695_p2, %p689_p13 }
  0x41   :  { %699 = shalt.err (!%p696_p3)
}
  0x42   :  { %s756_s0 = smov 256   ;;  %s757_s22 = smov 16  }
  0x43   :  { %47 = dma.hbm_to_vmem [thread:$0]  %s896_s2, 512, %s827_s28, [#allocation6], %s756_s0, %s756_s0, %s757_s22  }
  0x44   :  { %s758_s24 = smov [#allocation10]   ;;  %s700_s30 = scalar_lea.hbm %s898_s4, 8192 }
  0x45   :  { %s63_s25 = sshll.u32 %s758_s24, 4  ;;  %p701_p4 = scmp.ne.s32.totalorder %s898_s4, %s700_s30  ;;  %s64_s25 = int_to_ptr.vmem [resolvable:$true] %s63_s25 }
  0x46   :  { %p704_p5 = scmp.lt.u32.totalorder %s700_s30, %s898_s4 }
  0x48   :  { %p706_p6 = pnand %p704_p5, %p701_p4 }
  0x4a   :  { %709 = shalt.err (!%p706_p6)
}
  0x4b   :  { %s710_s12 = scalar_lea.vmem %s64_s25, 8192  ;;  %p715_p8 = scmp.lt.s32.totalorder %s64_s25, %s64_s25 }
  0x4c   :  { %p711_p7 = scmp.ne.s32.totalorder %s64_s25, %s710_s12  ;;  %p716_p9 = scmp.lt.s32.totalorder %s710_s12, %s710_s12 }
  0x4e   :  { %p717_p10 = por %p716_p9, %p715_p8 }
  0x50   :  { %p718_p11 = pnand %p717_p10, %p711_p7 }
  0x52   :  { %721 = shalt.err (!%p718_p11)
}
  0x53   :  { %69 = dma.hbm_to_vmem [thread:$0]  %s898_s4, 8192, %s64_s25, [#allocation9], %s756_s0, %s756_s0, %s757_s22  }
  0x54   :  { %744 = dma.done.wait [#allocation3], 128  }
  0x55   :  { %745 = vsyncadd [#allocation3], 4294967168 }
  0x56   :  { %746 = dma.done.wait [#allocation6], 640  }
  0x57   :  { %747 = vsyncadd [#allocation6], 4294966656 }
  0x58   :  { %748 = dma.done.wait [#allocation9], 8448  }
  0x59   :  { %749 = vsyncadd [#allocation9], 4294958848  ;;  %v759_v0 = vmov 0.0   ;;  %v96_v1 = vld [vmem:[#allocation8 + $0x8] sm:$0xff]  ;;  %v95_v2 = vld [vmem:[#allocation8] sm:$0xff]  ;;  %vm97_vm0 = vcmask 64512  }
  0x5a   :  { %165 = vmatprep.mubr.f32.mxu0 %v759_v0  ;;  %v94_v3 = vld [vmem:[#allocation5] sm:$0xff]  ;;  %101 = vmatprep.subr.mxu0 %v96_v1  ;;  %v91_v4 = vld [vmem:[#allocation7 + $0x8] sm:$0xff]  ;;  %v90_v6 = vld [vmem:[#allocation7] sm:$0xff]  ;;  %vm172_vm1 = vcmask 130048   ;;  %vm508_vm2 = vcmask 57344  }
  0x5b   :  { %v93_v5 = vld [vmem:[#allocation7 + $0x18] sm:$0xff]  ;;  %102 = vmatpush1.msra.mxu0 %v95_v2  ;;  %v92_v8 = vld [vmem:[#allocation7 + $0x10] sm:$0xff]  ;;  %v266_v11 = vld [vmem:[#allocation10 + $0x18] sm:$0xff] }
  0x5c   :  { %v530_v7 = vpack.c.bf16 %v93_v5, %v91_v4  ;;  %v264_v9 = vld [vmem:[#allocation10 + $0x8] sm:$0xff]  ;;  %527 = vmatmul.mubr.msk.f32.vlgmr.msra.gmra.mrb[0].mxu0 %vm97_vm0, %v94_v3  ;;  %v532_v10 = vpack.c.bf16 %v92_v8, %v90_v6  ;;  %v263_v12 = vld [vmem:[#allocation10] sm:$0xff]  ;;  %v265_v13 = vld [vmem:[#allocation10 + $0x10] sm:$0xff] }
  0x5d   :  { %240 = vmatprep.mubr.f32.mxu0 %v759_v0  ;;  %v534_v14 = vpack.c.bf16 %v266_v11, %v264_v9  ;;  %v536_v15 = vpack.c.bf16 %v265_v13, %v263_v12  ;;  %v268_v16 = vld [vmem:[#allocation10 + $0x28] sm:$0xff]  ;;  %v270_v17 = vld [vmem:[#allocation10 + $0x38] sm:$0xff]  ;;  %v267_v18 = vld [vmem:[#allocation10 + $0x20] sm:$0xff] }
  0x5e   :  { %531 = vmatprep.subr.bf16.mxu0 %v530_v7  ;;  %v538_v19 = vpack.c.bf16 %v270_v17, %v268_v16  ;;  %v269_v20 = vld [vmem:[#allocation10 + $0x30] sm:$0xff]  ;;  %v272_v21 = vld [vmem:[#allocation10 + $0x48] sm:$0xff]  ;;  %v274_v22 = vld [vmem:[#allocation10 + $0x58] sm:$0xff] }
  0x5f   :  { %533 = vmatpush1.bf16.msra.mxu0 %v532_v10  ;;  %535 = vmatprep.subr.bf16.mxu1 %v534_v14  ;;  %v540_v23 = vpack.c.bf16 %v269_v20, %v267_v18  ;;  %v89_v24 = vld [vmem:[#allocation2] sm:$0xff]  ;;  %v542_v25 = vpack.c.bf16 %v274_v22, %v272_v21  ;;  %v273_v27 = vld [vmem:[#allocation10 + $0x50] sm:$0xff]  ;;  %v276_v28 = vld [vmem:[#allocation10 + $0x68] sm:$0xff] }
  0x60   :  { %537 = vmatpush1.bf16.msra.mxu1 %v536_v15  ;;  %v271_v26 = vld [vmem:[#allocation10 + $0x40] sm:$0xff]  ;;  %v278_v29 = vld [vmem:[#allocation10 + $0x78] sm:$0xff]  ;;  %v277_v33 = vld [vmem:[#allocation10 + $0x70] sm:$0xff] }
  0x61   :  { %539 = vmatprep.subr.bf16.mxu1 %v538_v19  ;;  %v544_v30 = vpack.c.bf16 %v273_v27, %v271_v26  ;;  %v546_v31 = vpack.c.bf16 %v278_v29, %v276_v28  ;;  %v275_v32 = vld [vmem:[#allocation10 + $0x60] sm:$0xff]  ;;  %v280_v34 = vld [vmem:[#allocation10 + $0x88] sm:$0xff]  ;;  %v282_v35 = vld [vmem:[#allocation10 + $0x98] sm:$0xff] }
  0x62   :  { %v548_v36 = vpack.c.bf16 %v277_v33, %v275_v32  ;;  %v550_v37 = vpack.c.bf16 %v282_v35, %v280_v34  ;;  %v279_v38 = vld [vmem:[#allocation10 + $0x80] sm:$0xff]  ;;  %v281_v39 = vld [vmem:[#allocation10 + $0x90] sm:$0xff]  ;;  %v284_v40 = vld [vmem:[#allocation10 + $0xa8] sm:$0xff] }
  0x63   :  { %v286_v41 = vld [vmem:[#allocation10 + $0xb8] sm:$0xff]  ;;  %v552_v42 = vpack.c.bf16 %v281_v39, %v279_v38  ;;  %v283_v44 = vld [vmem:[#allocation10 + $0xa0] sm:$0xff]  ;;  %v285_v45 = vld [vmem:[#allocation10 + $0xb0] sm:$0xff] }
  0x64   :  { %528 = vmatmul.mubr.msk.f32.vlgmr.msra.gmra.mrb[0].mxu0 %vm172_vm1, %v89_v24  ;;  %541 = vmatpush1.bf16.msra.mxu1 %v540_v23  ;;  %v554_v43 = vpack.c.bf16 %v286_v41, %v284_v40  ;;  %v288_v46 = vld [vmem:[#allocation10 + $0xc8] sm:$0xff]  ;;  %v290_v47 = vld [vmem:[#allocation10 + $0xd8] sm:$0xff]  ;;  %v556_v48 = vpack.c.bf16 %v285_v45, %v283_v44  ;;  %v287_v50 = vld [vmem:[#allocation10 + $0xc0] sm:$0xff] }
  0x65   :  { %543 = vmatprep.subr.bf16.mxu1 %v542_v25  ;;  %v558_v49 = vpack.c.bf16 %v290_v47, %v288_v46  ;;  %v289_v51 = vld [vmem:[#allocation10 + $0xd0] sm:$0xff]  ;;  %v292_v52 = vld [vmem:[#allocation10 + $0xe8] sm:$0xff]  ;;  %v294_v53 = vld [vmem:[#allocation10 + $0xf8] sm:$0xff] }
  0x66   :  { %v560_v54 = vpack.c.bf16 %v289_v51, %v287_v50  ;;  %v562_v55 = vpack.c.bf16 %v294_v53, %v292_v52  ;;  %v291_v56 = vld [vmem:[#allocation10 + $0xe0] sm:$0xff]  ;;  %v293_v57 = vld [vmem:[#allocation10 + $0xf0] sm:$0xff]  ;;  %v296_v58 = vld [vmem:[#allocation10 + $0x108] sm:$0xff] }
  0x67   :  { %v298_v59 = vld [vmem:[#allocation10 + $0x118] sm:$0xff]  ;;  %v564_v60 = vpack.c.bf16 %v293_v57, %v291_v56  ;;  %v295_v62 = vld [vmem:[#allocation10 + $0x100] sm:$0xff]  ;;  %v297_v63 = vld [vmem:[#allocation10 + $0x110] sm:$0xff] }
  0x68   :  { %545 = vmatpush1.bf16.msra.mxu1 %v544_v30  ;;  %v566_v61 = vpack.c.bf16 %v298_v59, %v296_v58  ;;  %v300_v0 = vld [vmem:[#allocation10 + $0x128] sm:$0xff]  ;;  %v302_v1 = vld [vmem:[#allocation10 + $0x138] sm:$0xff]  ;;  %v568_v2 = vpack.c.bf16 %v297_v63, %v295_v62  ;;  %v299_v4 = vld [vmem:[#allocation10 + $0x120] sm:$0xff]  ;;  %v760_v59 = vmov 0  }
  0x69   :  { %547 = vmatprep.subr.bf16.mxu1 %v546_v31  ;;  %v570_v3 = vpack.c.bf16 %v302_v1, %v300_v0  ;;  %v301_v5 = vld [vmem:[#allocation10 + $0x130] sm:$0xff]  ;;  %v304_v6 = vld [vmem:[#allocation10 + $0x148] sm:$0xff]  ;;  %v306_v7 = vld [vmem:[#allocation10 + $0x158] sm:$0xff]  ;;  %611 = vset.pattern.permute.xlu0 %v760_v59 }
  0x6a   :  { %v572_v8 = vpack.c.bf16 %v301_v5, %v299_v4  ;;  %v574_v9 = vpack.c.bf16 %v306_v7, %v304_v6  ;;  %v303_v10 = vld [vmem:[#allocation10 + $0x140] sm:$0xff]  ;;  %v305_v11 = vld [vmem:[#allocation10 + $0x150] sm:$0xff]  ;;  %v308_v12 = vld [vmem:[#allocation10 + $0x168] sm:$0xff]  ;;  %v761_v6 = vmov 839922192  }
  0x6b   :  { %v310_v13 = vld [vmem:[#allocation10 + $0x178] sm:$0xff]  ;;  %v576_v14 = vpack.c.bf16 %v305_v11, %v303_v10  ;;  %v307_v16 = vld [vmem:[#allocation10 + $0x160] sm:$0xff]  ;;  %v309_v17 = vld [vmem:[#allocation10 + $0x170] sm:$0xff]  ;;  %v421_v7 = vunpack.c.l.s4 %v761_v6 }
  0x6c   :  { %549 = vmatpush1.bf16.msra.mxu1 %v548_v36  ;;  %v578_v15 = vpack.c.bf16 %v310_v13, %v308_v12  ;;  %v312_v18 = vld [vmem:[#allocation10 + $0x188] sm:$0xff]  ;;  %v314_v19 = vld [vmem:[#allocation10 + $0x198] sm:$0xff]  ;;  %v580_v20 = vpack.c.bf16 %v309_v17, %v307_v16  ;;  %v311_v22 = vld [vmem:[#allocation10 + $0x180] sm:$0xff] }
  0x6d   :  { %551 = vmatprep.subr.bf16.mxu1 %v550_v37  ;;  %v582_v21 = vpack.c.bf16 %v314_v19, %v312_v18  ;;  %v313_v23 = vld [vmem:[#allocation10 + $0x190] sm:$0xff]  ;;  %v316_v24 = vld [vmem:[#allocation10 + $0x1a8] sm:$0xff]  ;;  %v318_v25 = vld [vmem:[#allocation10 + $0x1b8] sm:$0xff] }
  0x6e   :  { %v584_v26 = vpack.c.bf16 %v313_v23, %v311_v22  ;;  %v586_v27 = vpack.c.bf16 %v318_v25, %v316_v24  ;;  %v315_v28 = vld [vmem:[#allocation10 + $0x1a0] sm:$0xff]  ;;  %v317_v29 = vld [vmem:[#allocation10 + $0x1b0] sm:$0xff]  ;;  %v320_v30 = vld [vmem:[#allocation10 + $0x1c8] sm:$0xff] }
  0x6f   :  { %v322_v31 = vld [vmem:[#allocation10 + $0x1d8] sm:$0xff]  ;;  %v588_v32 = vpack.c.bf16 %v317_v29, %v315_v28  ;;  %v319_v34 = vld [vmem:[#allocation10 + $0x1c0] sm:$0xff]  ;;  %v321_v35 = vld [vmem:[#allocation10 + $0x1d0] sm:$0xff] }
  0x70   :  { %553 = vmatpush1.bf16.msra.mxu1 %v552_v42  ;;  %v590_v33 = vpack.c.bf16 %v322_v31, %v320_v30  ;;  %v592_v36 = vpack.c.bf16 %v321_v35, %v319_v34  ;;  %v324_v37 = vld [vmem:[#allocation10 + $0x1e8] sm:$0xff]  ;;  %v326_v38 = vld [vmem:[#allocation10 + $0x1f8] sm:$0xff]  ;;  %v323_v40 = vld [vmem:[#allocation10 + $0x1e0] sm:$0xff] }
  0x71   :  { %555 = vmatprep.subr.bf16.mxu1 %v554_v43  ;;  %v594_v39 = vpack.c.bf16 %v326_v38, %v324_v37  ;;  %v325_v41 = vld [vmem:[#allocation10 + $0x1f0] sm:$0xff]  ;;  %v249_v43 = vlaneseq  ;;  %v247_v46 = vld [vmem:[%s900_s6] ss:$4 sm:$0x3]  ;;  %v414_v58 = vld [vmem:[%s900_s6 + $0x2] sm:$0x1] }
  0x72   :  { %v596_v42 = vpack.c.bf16 %v325_v41, %v323_v40  ;;  %v413_v56 = vld [vmem:[%s899_s5] sm:$0x3]  ;;  %417 = vperm.xlu0 %611, %v414_v58   ;;  %s762_s5 = smov [#allocation11]  }
  0x73   :  { %v250_v44 = vshrl.u32 %v249_v43, 7 }
  0x74   :  { %557 = vmatpush1.bf16.msra.mxu1 %v556_v48 }
  0x75   :  { %559 = vmatprep.subr.bf16.mxu1 %v558_v49  ;;  %v251_v45 = vsub.s32 0, %v250_v44  ;;  %v255_v47 = vsub.s32 1, %v250_v44 }
  0x77   :  { %v252_v48 = vrot.slane %v247_v46, %v251_v45  ;;  %v256_v49 = vrot.slane %v247_v46, %v255_v47  ;;  %v435_v57 = vrot.slane %v413_v56, %v255_v47  ;;  %v431_v5 = vrot.slane %v413_v56, %v251_v45 }
  0x78   :  { %561 = vmatpush1.bf16.msra.mxu1 %v560_v54 }
  0x79   :  { %563 = vmatprep.subr.bf16.mxu1 %v562_v55  ;;  %502 = vmatprep.mubr.f32.mxu0 %v435_v57 }
  0x7c   :  { %565 = vmatpush1.bf16.msra.mxu1 %v564_v60  ;;  %v529_v60 = vld [vmem:[%s900_s6 + $0x1] ss:$4 sm:$0x3]  ;;  %s516_s6 = sshll.u32 %s762_s5, 4  ;;  %s517_s6 = int_to_ptr.vmem [resolvable:$true] %s516_s6 }
  0x7d   :  { %567 = vmatprep.subr.bf16.mxu1 %v566_v61  ;;  %v333_v61 = vrot.slane %v529_v60, %v251_v45  ;;  %v337_v62 = vrot.slane %v529_v60, %v255_v47  ;;  %s722_s18 = scalar_lea.vmem %s517_s6, 16  ;;  %s726_s19 = scalar_lea.vmem %s517_s6, 32 }
  0x7e   :  { %p723_p12 = scmp.ne.s32.totalorder %s517_s6, %s722_s18  ;;  %p727_p13 = scmp.lt.s32.totalorder %s517_s6, %s517_s6 }
  0x7f   :  { %p728_p0 = scmp.lt.s32.totalorder %s726_s19, %s722_s18 }
  0x80   :  { %569 = vmatpush1.bf16.msra.mxu1 %v568_v2 }
  0x81   :  { %571 = vmatprep.subr.bf16.mxu1 %v570_v3  ;;  %p729_p1 = por %p728_p0, %p727_p13 }
  0x83   :  { %p730_p2 = pnand %p729_p1, %p723_p12 }
  0x84   :  { %573 = vmatpush1.bf16.msra.mxu1 %v572_v8  ;;  %v422_v8 = vunpack.c.0.s8 %v421_v7 }
  0x85   :  { %575 = vmatprep.subr.bf16.mxu1 %v574_v9 }
  0x86   :  { %v425_v9 = vsub.s32 %v422_v8, %v250_v44 }
  0x88   :  { %577 = vmatpush1.bf16.msra.mxu1 %v576_v14 }
  0x89   :  { %579 = vmatprep.subr.bf16.mxu1 %v578_v15 }
  0x8c   :  { %581 = vmatpush1.bf16.msra.mxu1 %v580_v20 }
  0x8d   :  { %583 = vmatprep.subr.bf16.mxu1 %v582_v21 }
  0x90   :  { %585 = vmatpush1.bf16.msra.mxu1 %v584_v26 }
  0x91   :  { %587 = vmatprep.subr.bf16.mxu1 %v586_v27 }
  0x94   :  { %589 = vmatpush1.bf16.msra.mxu1 %v588_v32 }
  0x95   :  { %591 = vmatprep.subr.bf16.mxu1 %v590_v33 }
  0x98   :  { %593 = vmatpush1.bf16.msra.mxu1 %v592_v36 }
  0x99   :  { %595 = vmatprep.subr.bf16.mxu1 %v594_v39 }
  0x9c   :  { %597 = vmatpush1.bf16.msra.mxu1 %v596_v42 }
  0xf1   :  { %v418_v10 = vpop.permute.xlu0 %417 }
  0xf2   :  { %v426_v11 = vrot.slane %v418_v10, %v425_v9 }
 0x137   :  { %v242_v50 = vpop.f32.mrb[0].mxu0 }
 0x138   :  { %v259_v51 = vadd.f32 %v252_v48, %v242_v50  ;;  %v244_v52 = vpop.f32.mrb[1].mxu0 }
 0x139   :  { %v260_v53 = vadd.f32 %v256_v49, %v244_v52 }
 0x13a   :  { %v261_v55 = vmax.f32 %v259_v51, 0.0 }
 0x13b   :  { %v262_v54 = vmax.f32 %v260_v53, 0.0 }
 0x13d   :  { %404 = vmatprep.mubr.f32.mxu1 %v262_v54 }
 0x13e   :  { %405 = vmatmul.mubr.f32.vlgmr.msra.gmra.mrb[0].mxu1 %v261_v55 }
 0x211   :  { %v406_v63 = vpop.f32.mrb[0].mxu1 }
 0x212   :  { %v407_v0 = vadd.f32 %v406_v63, %v333_v61  ;;  %v408_v1 = vpop.f32.mrb[1].mxu1 }
 0x213   :  { %v409_v2 = vadd.f32 %v408_v1, %v337_v62 }
 0x214   :  { %v411_v4 = vmax.f32 %v407_v0, 0.0 }
 0x215   :  { %v412_v3 = vmax.f32 %v409_v2, 0.0 }
 0x217   :  { %438 = vmatprep.subr.mxu0 %v412_v3 }
 0x218   :  { %439 = vmatpush1.xpose.msra.mxu0 %v411_v4 }
 0x21b   :  { %503 = vmatmul.mubr.f32.vlgmr.msra.gmra.mrb[2].mxu0 %v431_v5 }
 0x2ee   :  { %v504_v12 = vpop.f32.mrb[2].mxu0 }
 0x2ef   :  { %v505_v13 = vadd.f32 %v504_v12, %v426_v11  ;;  %v506_v14 = vpop.f32.mrb[3].mxu0 }
 0x2f1   :  { %509 = vst.msk [vmem:[#allocation11] sm:$0x1] %vm508_vm2, %v505_v13 }
 0x2f2   :  { %733 = shalt.err (!%p730_p2)
}
 0x2f3   :  { %s734_s0 = scalar_lea.hbm %s901_s7, 16 }
 0x2f4   :  { %p735_p3 = scmp.ne.s32.totalorder %s901_s7, %s734_s0  ;;  %p738_p4 = scmp.lt.u32.totalorder %s734_s0, %s901_s7 }
 0x2f6   :  { %p740_p5 = pnand %p738_p4, %p735_p3 }
 0x2f8   :  { %743 = shalt.err (!%p740_p5)
}
 0x2f9   :  { %519 = dma.vmem_to_hbm [thread:$0]  %s517_s6, 16, %s901_s7, [#allocation4]  }
 0x2fa   :  { %750 = dma.done.wait [#allocation4], 16  }
 0x2fb   :  { %751 = vsyncadd [#allocation4], 4294967280 }
 0x2fc   :  { %523 = vsyncpa [#allocation3], 1 }
 0x2fd   :  { %524 = vsyncpa [#allocation6], 1 }
 0x2fe   :  { %525 = vsyncpa [#allocation9], 1 }
 0x2ff   :  { %526 = vsyncpa [#allocation4], 1 }

</bundles_post_ra>
